<compile_context>
chip_gen: v7x
topology: tpu7x:2x2x1
jax: 0.10.0
libtpu: 0.0.40
codegen_flags: <defaults>
</compile_context>

<pallas_src>
import jax
import jax.numpy as jnp
from jax.experimental import pallas as pl
from jax.experimental.pallas import tpu as pltpu


def _round_up(x, m):
    return (x + m - 1) // m * m


def _cdiv(a, b):
    return (a + b - 1) // b


def _device_kind():
    try:
        return jax.devices()[0].device_kind.lower()
    except Exception:
        return ""


def _vmem_budget_bytes():
    """Per-generation usable VMEM (physical capacity minus headroom)."""
    cap = 0
    try:
        cap = int(pltpu.get_tpu_info().vmem_capacity_bytes)
    except Exception:
        cap = 0
    if cap <= 0:
        kind = _device_kind()
        is_v7 = ("v7" in kind) or ("7x" in kind)
        cap = (64 if is_v7 else 128) * 1024 * 1024
    return (cap * 7) // 8   # ~112 MiB on v5e/v6e, ~56 MiB on v7x


# ----------------------------------------------------------------------------
# Kernels
# ----------------------------------------------------------------------------

def _clip_single_step_kernel(x_ref, w_ref, b_ref, txt_ref, o_ref):
    """Whole-F projection (bf16 MXU, f32 acc) -> bias -> L2 norm -> sims."""
    emb = jnp.dot(x_ref[...], w_ref[...], preferred_element_type=jnp.float32)
    emb = emb + b_ref[...]
    inv_norm = jax.lax.rsqrt(jnp.sum(emb * emb, axis=-1, keepdims=True) + 1e-12)
    img_n = (emb * inv_norm).astype(jnp.bfloat16)
    # txt_ref is pre-normalized, pre-transposed (D_pad, C_pad) bf16.
    o_ref[...] = jnp.dot(img_n, txt_ref[...], preferred_element_type=jnp.float32)


def _clip_ktiled_kernel(x_ref, w_ref, b_ref, txt_ref, o_ref, acc_ref):
    """K-tiled projection accumulating into f32 VMEM scratch; fused epilogue."""
    k = pl.program_id(1)

    @pl.when(k == 0)
    def _init():
        acc_ref[...] = jnp.zeros_like(acc_ref)

    acc_ref[...] += jnp.dot(x_ref[...], w_ref[...],
                            preferred_element_type=jnp.float32)

    @pl.when(k == pl.num_programs(1) - 1)
    def _epilogue():
        emb = acc_ref[...] + b_ref[...]
        inv_norm = jax.lax.rsqrt(
            jnp.sum(emb * emb, axis=-1, keepdims=True) + 1e-12)
        img_n = (emb * inv_norm).astype(jnp.bfloat16)
        o_ref[...] = jnp.dot(img_n, txt_ref[...],
                             preferred_element_type=jnp.float32)


# ----------------------------------------------------------------------------
# Wrapper
# ----------------------------------------------------------------------------

def clip_classifier_forward(x_nchw, img_proj_w, img_proj_b, class_embs,
                            *, tb=None, tk_target=512):
    """Pallas equivalent of CLIPClassifier.forward(x). Returns (B, n_classes) f32."""
    B = int(x_nchw.shape[0])
    F = int(x_nchw.shape[1] * x_nchw.shape[2] * x_nchw.shape[3])
    D = int(img_proj_w.shape[1])
    C = int(class_embs.shape[0])

    D_pad = _round_up(D, 128)
    C_pad = _round_up(C, 128)
    F128 = _round_up(F, 128)

    kind = _device_kind()
    is_v5e = ("v5 lite" in kind) or ("v5e" in kind)
    is_v7 = ("v7" in kind) or ("7x" in kind)
    budget = _vmem_budget_bytes()

    # ---- batch tile ---------------------------------------------------------
    B_pad = _round_up(B, 8)
    if tb is None:
        tb_cap = 128 if is_v5e else 256          # v6e/v7x MXU is 256x256
        tb = min(tb_cap, B_pad)
        # v7x has 2 TensorCores: keep >= 2 batch tiles on the parallel axis.
        if is_v7 and B_pad >= 16 and B_pad // tb < 2:
            tb = max(8, _round_up(B_pad // 2, 8))
    tb = max(8, min(tb, B_pad))

    # ---- fit the double-buffered working set into the per-generation budget --
    def fixed_bytes(tb_):
        return (2 * D_pad * C_pad * 2     # bf16 class embeddings (resident)
                + 2 * D_pad * 4           # f32 bias
                + 2 * tb_ * C_pad * 4     # f32 output tiles
                + tb_ * D_pad * 4)        # f32 accumulator scratch

    def per_tk_bytes(tb_):
        # bf16 x tiles (double-buffered) + bf16 w tiles (up to triple-buffered)
        return 2 * tb_ * 2 + 3 * D_pad * 2

    while True:
        avail = budget - fixed_bytes(tb)
        tk_max = (avail // per_tk_bytes(tb)) // 128 * 128 if avail > 0 else 0
        if tk_max >= 128 or tb <= 8:
            break
        tb = max(8, tb // 2)
    tk_max = max(tk_max, 128)

    # ---- K tiling: pad F to 128 first, then pick tk as a 128-multiple --------
    if tk_max >= F128:
        tk, n_k = F128, 1                 # W fully resident -> fetched once
    else:
        tk_t = max(128, min(tk_target, tk_max))
        n_k = _cdiv(F128, tk_t)
        tk = _round_up(_cdiv(F128, n_k), 128)
        while tk > tk_max:
            n_k += 1
            tk = _round_up(_cdiv(F128, n_k), 128)
    F_pad = n_k * tk
    B_pad = _round_up(B_pad, tb)
    n_btiles = B_pad // tb

    # ---- operand prep (padding is zero -> cannot pollute norms / sims) -------
    x_flat = x_nchw.reshape(B, F)
    x_p = jnp.pad(x_flat.astype(jnp.bfloat16),
                  ((0, B_pad - B), (0, F_pad - F)))
    w_p = jnp.pad(img_proj_w.astype(jnp.bfloat16),
                  ((0, F_pad - F), (0, D_pad - D)))
    b_p = jnp.pad(img_proj_b.astype(jnp.float32).reshape(1, D),
                  ((0, 0), (0, D_pad - D)))

    # Class embeddings are constant per classifier (exactly what embed_txt()
    # produces): normalize once in f32, pre-transpose to (D, C), store bf16.
    txt = class_embs.astype(jnp.float32)
    txt_n = txt * jax.lax.rsqrt(
        jnp.sum(txt * txt, axis=-1, keepdims=True) + 1e-12)
    txt_p = jnp.pad(txt_n, ((0, C_pad - C), (0, D_pad - D))).T
    txt_p = txt_p.astype(jnp.bfloat16)            # (D_pad, C_pad)

    # ---- scheduling hints -----------------------------------------------------
    vmem_limit = int(budget)   # tiles were chosen to fit this budget
    w_reads = 1 if n_k == 1 else n_btiles
    cost = pl.CostEstimate(
        flops=2 * B_pad * F_pad * D_pad + 2 * B_pad * D_pad * C_pad,
        transcendentals=B_pad,
        bytes_accessed=(x_p.size * 2 + w_p.size * 2 * w_reads + b_p.size * 4
                        + txt_p.size * 2 + B_pad * C_pad * 4),
    )

    out_shape = jax.ShapeDtypeStruct((B_pad, C_pad), jnp.float32)

    if n_k == 1:
        out = pl.pallas_call(
            _clip_single_step_kernel,
            out_shape=out_shape,
            grid_spec=pltpu.PrefetchScalarGridSpec(
                num_scalar_prefetch=0,
                grid=(n_btiles,),
                in_specs=[
                    pl.BlockSpec((tb, F_pad), lambda i: (i, 0)),        # x (bf16)
                    pl.BlockSpec((F_pad, D_pad), lambda i: (0, 0)),     # w (bf16, resident)
                    pl.BlockSpec((1, D_pad), lambda i: (0, 0)),         # bias (f32)
                    pl.BlockSpec((D_pad, C_pad), lambda i: (0, 0)),     # class embs (bf16)
                ],
                out_specs=pl.BlockSpec((tb, C_pad), lambda i: (i, 0)),
            ),
            compiler_params=pltpu.CompilerParams(
                dimension_semantics=("parallel",),
                vmem_limit_bytes=vmem_limit,
            ),
            cost_estimate=cost,
        )(x_p, w_p, b_p, txt_p)
    else:
        out = pl.pallas_call(
            _clip_ktiled_kernel,
            out_shape=out_shape,
            grid_spec=pltpu.PrefetchScalarGridSpec(
                num_scalar_prefetch=0,
                grid=(n_btiles, n_k),
                in_specs=[
                    pl.BlockSpec((tb, tk), lambda i, k: (i, k)),        # x (bf16)
                    # W is re-streamed per batch tile; triple-buffer to hide the
                    # DMA restart bubble at batch-tile boundaries.
                    pl.BlockSpec((tk, D_pad), lambda i, k: (k, 0),
                                 pipeline_mode=pl.Buffered(3)),         # w (bf16)
                    pl.BlockSpec((1, D_pad), lambda i, k: (0, 0)),      # bias (f32)
                    pl.BlockSpec((D_pad, C_pad), lambda i, k: (0, 0)),  # class embs (bf16)
                ],
                out_specs=pl.BlockSpec((tb, C_pad), lambda i, k: (i, 0)),
                scratch_shapes=[pltpu.VMEM((tb, D_pad), jnp.float32)],
            ),
            compiler_params=pltpu.CompilerParams(
                dimension_semantics=("parallel", "arbitrary"),
                vmem_limit_bytes=vmem_limit,
            ),
            cost_estimate=cost,
        )(x_p, w_p, b_p, txt_p)

    return out[:B, :C]


if __name__ == "__main__":
    key = jax.random.PRNGKey(0)
    k_x, k_w, k_b, k_t = jax.random.split(key, 4)

    B, C_in, H, W = 2, 4, 16, 16     # input image batch (NCHW)
    D = 32                           # CLIP embedding dim (small synthetic)
    N_CLASSES = 8                    # len(output_names)

    x = jax.random.normal(k_x, (B, C_in, H, W), dtype=jnp.float32)

    # deterministic synthetic "encoder" parameters (stand-in for encode_image)
    F = C_in * H * W
    img_proj_w = jax.random.normal(k_w, (F, D), dtype=jnp.float32) * 0.02
    img_proj_b = jax.random.normal(k_b, (D,), dtype=jnp.float32) * 0.02

    # deterministic synthetic class-string embeddings (stand-in for embed_txt)
    class_embs = jax.random.normal(k_t, (N_CLASSES, D), dtype=jnp.float32)

    sims = clip_classifier_forward(x, img_proj_w, img_proj_b, class_embs)
    sims = jax.block_until_ready(sims)

    # pure-JAX reference (matching bf16-operand / f32-accum projection)
    x_flat = x.reshape(B, F)
    emb_ref = jnp.dot(x_flat.astype(jnp.bfloat16),
                      img_proj_w.astype(jnp.bfloat16),
                      preferred_element_type=jnp.float32) + img_proj_b
    emb_ref = emb_ref / jnp.linalg.norm(emb_ref, axis=-1, keepdims=True)
    txt_ref = class_embs / jnp.linalg.norm(class_embs, axis=-1, keepdims=True)
    sims_ref = emb_ref @ txt_ref.T

    assert sims.shape == (B, N_CLASSES)
    assert sims.dtype == jnp.float32
    assert bool(jnp.all(jnp.abs(sims) <= 1.0 + 1e-2))   # bf16 epilogue slack
    assert bool(jnp.max(jnp.abs(sims - sims_ref)) < 2e-2)

    print("KERNEL_OK")
</pallas_src>

<mosaic_0001>
module attributes {stable_mosaic.version = 11 : i64} {
  func.func @_clip_single_step_kernel(%arg0: i32, %arg1: memref<8x1024xbf16, #tpu.memory_space<vmem>>, %arg2: memref<1024x128xbf16, #tpu.memory_space<vmem>>, %arg3: memref<1x128xf32, #tpu.memory_space<vmem>>, %arg4: memref<128x128xbf16, #tpu.memory_space<vmem>>, %arg5: memref<8x128xf32, #tpu.memory_space<vmem>>) attributes {dimension_semantics = [#tpu.dimension_semantics<parallel>], iteration_bounds = array<i64: 1>, scalar_prefetch = 0 : i64, scratch_operands = 0 : i64, tpu.core_type = #tpu.core_type<tc>, window_params = [{transform_indices = @transform_0, window_bounds = array<i64: 8, 1024>}, {pipeline_mode = #tpu.pipeline_mode<synchronous>, transform_indices = @transform_1, window_bounds = array<i64: 1024, 128>}, {pipeline_mode = #tpu.pipeline_mode<synchronous>, transform_indices = @transform_2, window_bounds = array<i64: 1, 128>}, {pipeline_mode = #tpu.pipeline_mode<synchronous>, transform_indices = @transform_3, window_bounds = array<i64: 128, 128>}, {transform_indices = @transform_4, window_bounds = array<i64: 8, 128>}]} {
    %c0 = arith.constant 0 : index
    %c0_0 = arith.constant 0 : index
    %0 = vector.load %arg1[%c0, %c0_0] : memref<8x1024xbf16, #tpu.memory_space<vmem>>, vector<8x1024xbf16>
    %c0_1 = arith.constant 0 : index
    %c0_2 = arith.constant 0 : index
    %1 = vector.load %arg2[%c0_1, %c0_2] : memref<1024x128xbf16, #tpu.memory_space<vmem>>, vector<1024x128xbf16>
    %cst = arith.constant dense<0.000000e+00> : vector<8x128xf32>
    %2 = tpu.matmul %0, %1, %cst {dimension_numbers = #tpu.dot_dimension_numbers<[1], [0], [0], [1], [0, 0, 1, 1], [], []>} : vector<8x1024xbf16>, vector<1024x128xbf16>, vector<8x128xf32> -> vector<8x128xf32>
    %c0_3 = arith.constant 0 : index
    %c0_4 = arith.constant 0 : index
    %3 = vector.load %arg3[%c0_3, %c0_4] : memref<1x128xf32, #tpu.memory_space<vmem>>, vector<1x128xf32>
    %4 = vector.broadcast %3 : vector<1x128xf32> to vector<8x128xf32>
    %5 = arith.addf %2, %4 : vector<8x128xf32>
    %6 = arith.mulf %5, %5 : vector<8x128xf32>
    %cst_5 = arith.constant dense<0.000000e+00> : vector<8xf32>
    %7 = vector.multi_reduction <add>, %6, %cst_5 [1] : vector<8x128xf32> to vector<8xf32>
    %8 = vector.shape_cast %7 : vector<8xf32> to vector<8x1xf32>
    %cst_6 = arith.constant 9.99999996E-13 : f32
    %9 = vector.broadcast %cst_6 : f32 to vector<8x1xf32>
    %10 = arith.addf %8, %9 : vector<8x1xf32>
    %11 = math.rsqrt %10 : vector<8x1xf32>
    %12 = vector.broadcast %11 : vector<8x1xf32> to vector<8x128xf32>
    %13 = arith.mulf %5, %12 : vector<8x128xf32>
    %14 = arith.truncf %13 : vector<8x128xf32> to vector<8x128xbf16>
    %c0_7 = arith.constant 0 : index
    %c0_8 = arith.constant 0 : index
    %15 = vector.load %arg4[%c0_7, %c0_8] : memref<128x128xbf16, #tpu.memory_space<vmem>>, vector<128x128xbf16>
    %cst_9 = arith.constant dense<0.000000e+00> : vector<8x128xf32>
    %16 = tpu.matmul %14, %15, %cst_9 {dimension_numbers = #tpu.dot_dimension_numbers<[1], [0], [0], [1], [0, 0, 1, 1], [], []>} : vector<8x128xbf16>, vector<128x128xbf16>, vector<8x128xf32> -> vector<8x128xf32>
    %c0_10 = arith.constant 0 : index
    %c0_11 = arith.constant 0 : index
    %17 = vector.load %arg5[%c0_10, %c0_11] : memref<8x128xf32, #tpu.memory_space<vmem>>, vector<8x128xf32>
    tpu.vector_store %arg5[%c0_10, %c0_11], %16 {strides = array<i32>} : memref<8x128xf32, #tpu.memory_space<vmem>>, vector<8x128xf32>,
    return
  }
  func.func @transform_0(%arg0: i32) -> (i32, i32) {
    %c0_i32 = arith.constant 0 : i32
    %c0_i32_0 = arith.constant 0 : i32
    return %arg0, %c0_i32 : i32, i32
  }
  func.func @transform_1(%arg0: i32) -> (i32, i32) {
    %c0_i32 = arith.constant 0 : i32
    %c0_i32_0 = arith.constant 0 : i32
    %c0_i32_1 = arith.constant 0 : i32
    return %c0_i32, %c0_i32_0 : i32, i32
  }
  func.func @transform_2(%arg0: i32) -> (i32, i32) {
    %c0_i32 = arith.constant 0 : i32
    %c0_i32_0 = arith.constant 0 : i32
    %c0_i32_1 = arith.constant 0 : i32
    return %c0_i32, %c0_i32_0 : i32, i32
  }
  func.func @transform_3(%arg0: i32) -> (i32, i32) {
    %c0_i32 = arith.constant 0 : i32
    %c0_i32_0 = arith.constant 0 : i32
    %c0_i32_1 = arith.constant 0 : i32
    return %c0_i32, %c0_i32_0 : i32, i32
  }
  func.func @transform_4(%arg0: i32) -> (i32, i32) {
    %c0_i32 = arith.constant 0 : i32
    %c0_i32_0 = arith.constant 0 : i32
    return %arg0, %c0_i32 : i32, i32
  }
}

</mosaic_0001>

<bundles_post_ra>
// kernel: tpu_custom_call.1
= control target key start
LH: loop header
LB: loop body
LE: loop exit
PB: predicated region body
PF: predicated region fallthrough
CT: control target
= control target key end

     0   :  { %9 = vsyncpa [#allocation3], 0  ;;  %s1417_s0 = inlined_call_operand.hbm [shape: bf16[8,1024], index: 0, kind: input, shape index: {}]   ;;  %s1418_s1 = inlined_call_operand.hbm [shape: bf16[1024,128], index: 1, kind: input, shape index: {}]   ;;  %s1419_s2 = inlined_call_operand.hbm [shape: f32[1,128], index: 2, kind: input, shape index: {}]   ;;  %s1420_s3 = inlined_call_operand.hbm [shape: bf16[128,128], index: 3, kind: input, shape index: {}]   ;;  %s1421_s4 = inlined_call_operand.hbm [shape: f32[8,128], index: 4, kind: output, shape index: {}]  }
   0x1   :  { %10 = vsyncpa [#allocation6], 0 }
   0x2   :  { %11 = vsyncpa [#allocation9], 0 }
   0x3   :  { %12 = vsyncpa [#allocation4], 0  ;;  %s1317_s15 = smov [#allocation5]   ;;  %s1199_s19 = scalar_lea.hbm %s1418_s1, 8192 }
   0x4   :  { %s28_s16 = sshll.u32 %s1317_s15, 4  ;;  %p1200_p0 = scmp.ne.s32.totalorder %s1418_s1, %s1199_s19  ;;  %s29_s16 = int_to_ptr.vmem [resolvable:$true] %s28_s16 }
   0x5   :  { %p1203_p1 = scmp.lt.u32.totalorder %s1199_s19, %s1418_s1 }
   0x7   :  { %p1205_p2 = pnand %p1203_p1, %p1200_p0 }
   0x9   :  { %1208 = shalt.err (!%p1205_p2)
}
   0xa   :  { %s1209_s24 = scalar_lea.vmem %s29_s16, 8192  ;;  %p1214_p4 = scmp.lt.s32.totalorder %s29_s16, %s29_s16 }
   0xb   :  { %p1210_p3 = scmp.ne.s32.totalorder %s29_s16, %s1209_s24  ;;  %p1215_p5 = scmp.lt.s32.totalorder %s1209_s24, %s1209_s24 }
   0xd   :  { %p1216_p6 = por %p1215_p5, %p1214_p4 }
   0xf   :  { %p1217_p7 = pnand %p1216_p6, %p1210_p3 }
  0x11   :  { %1220 = shalt.err (!%p1217_p7)
}
  0x12   :  { %s1318_s25 = smov 64   ;;  %s1319_s26 = smov 4  }
  0x13   :  { %34 = dma.hbm_to_vmem [thread:$0]  %s1418_s1, 8192, %s29_s16, [#allocation6], %s1318_s25, %s1318_s25, %s1319_s26  }
  0x14   :  { %s1320_s29 = smov [#allocation2]   ;;  %s1321_s5 = smov [#allocation7]  }
  0x15   :  { %s19_s30 = sshll.u32 %s1320_s29, 4  ;;  %s41_s6 = sshll.u32 %s1321_s5, 4  ;;  %s20_s30 = int_to_ptr.vmem [resolvable:$true] %s19_s30  ;;  %s42_s6 = int_to_ptr.vmem [resolvable:$true] %s41_s6 }
  0x16   :  { %s1221_s9 = scalar_lea.hbm %s1417_s0, 512 }
  0x17   :  { %p1222_p8 = scmp.ne.s32.totalorder %s1417_s0, %s1221_s9  ;;  %p1225_p9 = scmp.lt.u32.totalorder %s1221_s9, %s1417_s0 }
  0x19   :  { %p1227_p10 = pnand %p1225_p9, %p1222_p8 }
  0x1b   :  { %1230 = shalt.err (!%p1227_p10)
}
  0x1c   :  { %s1231_s1 = scalar_lea.vmem %s20_s30, 512  ;;  %p1236_p12 = scmp.lt.s32.totalorder %s20_s30, %s20_s30 }
  0x1d   :  { %p1232_p11 = scmp.ne.s32.totalorder %s20_s30, %s1231_s1  ;;  %p1237_p13 = scmp.lt.s32.totalorder %s1231_s1, %s1231_s1 }
  0x1f   :  { %p1238_p0 = por %p1237_p13, %p1236_p12 }
  0x21   :  { %p1239_p1 = pnand %p1238_p0, %p1232_p11 }
  0x23   :  { %1242 = shalt.err (!%p1239_p1)
}
  0x24   :  { %22 = dma.hbm_to_vmem [thread:$0]  %s1417_s0, 512, %s20_s30, [#allocation3]  }
  0x25   :  { %s1243_s18 = scalar_lea.hbm %s1419_s2, 16 }
  0x26   :  { %p1244_p2 = scmp.ne.s32.totalorder %s1419_s2, %s1243_s18  ;;  %p1247_p3 = scmp.lt.u32.totalorder %s1243_s18, %s1419_s2 }
  0x28   :  { %p1249_p4 = pnand %p1247_p3, %p1244_p2 }
  0x2a   :  { %1252 = shalt.err (!%p1249_p4)
}
  0x2b   :  { %s1253_s23 = scalar_lea.vmem %s42_s6, 16  ;;  %s1257_s24 = scalar_lea.vmem %s42_s6, 32 }
  0x2c   :  { %p1254_p5 = scmp.ne.s32.totalorder %s42_s6, %s1253_s23  ;;  %p1258_p6 = scmp.lt.s32.totalorder %s42_s6, %s42_s6 }
  0x2d   :  { %p1259_p7 = scmp.lt.s32.totalorder %s1257_s24, %s1253_s23 }
  0x2f   :  { %p1260_p8 = por %p1259_p7, %p1258_p6 }
  0x31   :  { %p1261_p9 = pnand %p1260_p8, %p1254_p5 }
  0x33   :  { %1264 = shalt.err (!%p1261_p9)
}
  0x34   :  { %44 = dma.hbm_to_vmem [thread:$0]  %s1419_s2, 16, %s42_s6, [#allocation6]  }
  0x35   :  { %s1322_s28 = smov [#allocation8]   ;;  %s1265_s7 = scalar_lea.hbm %s1420_s3, 1024 }
  0x36   :  { %s50_s29 = sshll.u32 %s1322_s28, 4  ;;  %p1266_p10 = scmp.ne.s32.totalorder %s1420_s3, %s1265_s7  ;;  %s51_s29 = int_to_ptr.vmem [resolvable:$true] %s50_s29 }
  0x37   :  { %p1269_p11 = scmp.lt.u32.totalorder %s1265_s7, %s1420_s3 }
  0x39   :  { %p1271_p12 = pnand %p1269_p11, %p1266_p10 }
  0x3b   :  { %1274 = shalt.err (!%p1271_p12)
}
  0x3c   :  { %s1275_s12 = scalar_lea.vmem %s51_s29, 1024  ;;  %p1280_p0 = scmp.lt.s32.totalorder %s51_s29, %s51_s29 }
  0x3d   :  { %p1276_p13 = scmp.ne.s32.totalorder %s51_s29, %s1275_s12  ;;  %p1281_p1 = scmp.lt.s32.totalorder %s1275_s12, %s1275_s12 }
  0x3f   :  { %p1282_p2 = por %p1281_p1, %p1280_p0 }
  0x41   :  { %p1283_p3 = pnand %p1282_p2, %p1276_p13 }
  0x43   :  { %1286 = shalt.err (!%p1283_p3)
}
  0x44   :  { %56 = dma.hbm_to_vmem [thread:$0]  %s1420_s3, 1024, %s51_s29, [#allocation9], %s1318_s25, %s1318_s25, %s1319_s26  }
  0x45   :  { %1309 = dma.done.wait [#allocation3], 512  }
  0x46   :  { %1310 = vsyncadd [#allocation3], 4294966784 }
  0x47   :  { %1311 = dma.done.wait [#allocation6], 8208  }
  0x48   :  { %1312 = vsyncadd [#allocation6], 4294959088 }
  0x49   :  { %1313 = dma.done.wait [#allocation9], 1024  }
  0x4a   :  { %1314 = vsyncadd [#allocation9], 4294966272  ;;  %v1117_v0 = vld [vmem:[#allocation5 + $0x40] sm:$0xff]   ;;  %v1121_v4 = vld [vmem:[#allocation5 + $0x48] sm:$0xff]   ;;  %vm1324_vm0 = vmmov 0   ;;  %s1325_s3 = smov [#allocation10]  }
  0x4b   :  { %v1118_v1 = vld [vmem:[#allocation5 + $0xc0] sm:$0xff]   ;;  %991 = vmatprep.subr.bf16.mxu0 %v1117_v0  ;;  %v1122_v5 = vld [vmem:[#allocation5 + $0xc8] sm:$0xff]   ;;  %v1125_v8 = vld [vmem:[#allocation5 + $0x50] sm:$0xff]   ;;  %s899_s25 = sshll.u32 %s1325_s3, 4  ;;  %s900_s25 = int_to_ptr.vmem [resolvable:$true] %s899_s25 }
  0x4c   :  { %v1119_v2 = vld [vmem:[#allocation5] sm:$0xff]   ;;  %1013 = vmatprep.subr.bf16.mxu1 %v1118_v1  ;;  %v1123_v6 = vld [vmem:[#allocation5 + $0x8] sm:$0xff]   ;;  %v1126_v9 = vld [vmem:[#allocation5 + $0xd0] sm:$0xff]   ;;  %s1287_s26 = scalar_lea.vmem %s900_s25, 128  ;;  %p1292_p5 = scmp.lt.s32.totalorder %s900_s25, %s900_s25 }
  0x4d   :  { %v1120_v3 = vld [vmem:[#allocation5 + $0x80] sm:$0xff]   ;;  %992 = vmatpush3.bf16.msra.mxu0 %v1119_v2  ;;  %v1124_v7 = vld [vmem:[#allocation5 + $0x88] sm:$0xff]   ;;  %v1127_v10 = vld [vmem:[#allocation5 + $0x10] sm:$0xff]   ;;  %p1288_p4 = scmp.ne.s32.totalorder %s900_s25, %s1287_s26  ;;  %p1293_p6 = scmp.lt.s32.totalorder %s1287_s26, %s1287_s26 }
  0x4e   :  { %1014 = vmatpush3.bf16.msra.mxu1 %v1120_v3  ;;  %993 = vmatprep.subr.bf16.mxu0 %v1121_v4  ;;  %v1128_v11 = vld [vmem:[#allocation5 + $0x90] sm:$0xff]   ;;  %v1129_v12 = vld [vmem:[#allocation5 + $0x58] sm:$0xff]   ;;  %v1133_v16 = vld [vmem:[#allocation5 + $0x60] sm:$0xff]  }
  0x4f   :  { %1015 = vmatprep.subr.bf16.mxu1 %v1122_v5  ;;  %v1130_v13 = vld [vmem:[#allocation5 + $0xd8] sm:$0xff]   ;;  %v1134_v17 = vld [vmem:[#allocation5 + $0xe0] sm:$0xff]   ;;  %v1137_v20 = vld [vmem:[#allocation5 + $0x68] sm:$0xff]   ;;  %p1294_p7 = por %p1293_p6, %p1292_p5 }
  0x50   :  { %v1131_v14 = vld [vmem:[#allocation5 + $0x18] sm:$0xff]   ;;  %v1135_v18 = vld [vmem:[#allocation5 + $0x20] sm:$0xff]   ;;  %v1138_v21 = vld [vmem:[#allocation5 + $0xe8] sm:$0xff]  }
  0x51   :  { %994 = vmatpush3.bf16.msra.mxu0 %v1123_v6  ;;  %v1132_v15 = vld [vmem:[#allocation5 + $0x98] sm:$0xff]   ;;  %v1136_v19 = vld [vmem:[#allocation5 + $0xa0] sm:$0xff]   ;;  %v1139_v22 = vld [vmem:[#allocation5 + $0x28] sm:$0xff]   ;;  %p1295_p8 = pnand %p1294_p7, %p1288_p4 }
  0x52   :  { %1016 = vmatpush3.bf16.msra.mxu1 %v1124_v7  ;;  %995 = vmatprep.subr.bf16.mxu0 %v1125_v8  ;;  %v1140_v23 = vld [vmem:[#allocation5 + $0xa8] sm:$0xff]   ;;  %v1141_v24 = vld [vmem:[#allocation5 + $0x70] sm:$0xff]   ;;  %v1145_v28 = vld [vmem:[#allocation5 + $0x78] sm:$0xff]  }
  0x53   :  { %1017 = vmatprep.subr.bf16.mxu1 %v1126_v9  ;;  %v1142_v25 = vld [vmem:[#allocation5 + $0xf0] sm:$0xff]   ;;  %v1146_v29 = vld [vmem:[#allocation5 + $0xf8] sm:$0xff]   ;;  %v70_v32 = vld [vmem:[#allocation2] sm:$0xff] }
  0x54   :  { %v1143_v26 = vld [vmem:[#allocation5 + $0x30] sm:$0xff]   ;;  %v1147_v30 = vld [vmem:[#allocation5 + $0x38] sm:$0xff]   ;;  %v71_v33 = vld [vmem:[#allocation2 + $0x8] sm:$0xff]  ;;  %v911_v34 = vcombine.low %v70_v32, %v70_v32  ;;  %v912_v35 = vcombine.high %v70_v32, %v70_v32 }
  0x55   :  { %996 = vmatpush3.bf16.msra.mxu0 %v1127_v10  ;;  %v1144_v27 = vld [vmem:[#allocation5 + $0xb0] sm:$0xff]   ;;  %v1148_v31 = vld [vmem:[#allocation5 + $0xb8] sm:$0xff]   ;;  %v913_v36 = vcombine.low %v71_v33, %v71_v33  ;;  %v914_v37 = vcombine.high %v71_v33, %v71_v33  ;;  %v1153_v38 = vld [vmem:[#allocation5 + $0x140] sm:$0xff]  }
  0x56   :  { %1018 = vmatpush3.bf16.msra.mxu1 %v1128_v11  ;;  %997 = vmatprep.subr.bf16.mxu0 %v1129_v12  ;;  %v1154_v39 = vld [vmem:[#allocation5 + $0x1c0] sm:$0xff]   ;;  %v1157_v42 = vld [vmem:[#allocation5 + $0x148] sm:$0xff]   ;;  %v1161_v46 = vld [vmem:[#allocation5 + $0x150] sm:$0xff]  }
  0x57   :  { %1019 = vmatprep.subr.bf16.mxu1 %v1130_v13  ;;  %653 = vmatprep.mubr.bf16.mxu0 %v912_v35  ;;  %v1155_v40 = vld [vmem:[#allocation5 + $0x100] sm:$0xff]   ;;  %v1158_v43 = vld [vmem:[#allocation5 + $0x1c8] sm:$0xff]   ;;  %v1162_v47 = vld [vmem:[#allocation5 + $0x1d0] sm:$0xff]   ;;  %v1323_v13 = vmov 0.0  }
  0x58   :  { %693 = vmatprep.mubr.bf16.mxu1 %v914_v37  ;;  %v1156_v41 = vld [vmem:[#allocation5 + $0x180] sm:$0xff]   ;;  %v1159_v44 = vld [vmem:[#allocation5 + $0x108] sm:$0xff]   ;;  %v1163_v48 = vld [vmem:[#allocation5 + $0x110] sm:$0xff]  }
  0x59   :  { %998 = vmatpush3.bf16.msra.mxu0 %v1131_v14  ;;  %v1160_v45 = vld [vmem:[#allocation5 + $0x188] sm:$0xff]   ;;  %v1164_v49 = vld [vmem:[#allocation5 + $0x190] sm:$0xff]   ;;  %v1165_v50 = vld [vmem:[#allocation5 + $0x158] sm:$0xff]  }
  0x5a   :  { %1020 = vmatpush3.bf16.msra.mxu1 %v1132_v15  ;;  %999 = vmatprep.subr.bf16.mxu0 %v1133_v16  ;;  %v1166_v51 = vld [vmem:[#allocation5 + $0x1d8] sm:$0xff]   ;;  %v1169_v54 = vld [vmem:[#allocation5 + $0x160] sm:$0xff]   ;;  %v1173_v58 = vld [vmem:[#allocation5 + $0x168] sm:$0xff]  }
  0x5b   :  { %1021 = vmatprep.subr.bf16.mxu1 %v1134_v17  ;;  %v1167_v52 = vld [vmem:[#allocation5 + $0x118] sm:$0xff]   ;;  %v1170_v55 = vld [vmem:[#allocation5 + $0x1e0] sm:$0xff]   ;;  %v1174_v59 = vld [vmem:[#allocation5 + $0x1e8] sm:$0xff]  }
  0x5c   :  { %v1168_v53 = vld [vmem:[#allocation5 + $0x198] sm:$0xff]   ;;  %v1171_v56 = vld [vmem:[#allocation5 + $0x120] sm:$0xff]   ;;  %v1175_v60 = vld [vmem:[#allocation5 + $0x128] sm:$0xff]  }
  0x5d   :  { %1000 = vmatpush3.bf16.msra.mxu0 %v1135_v18  ;;  %v1172_v57 = vld [vmem:[#allocation5 + $0x1a0] sm:$0xff]   ;;  %v1176_v61 = vld [vmem:[#allocation5 + $0x1a8] sm:$0xff]   ;;  %v1177_v62 = vld [vmem:[#allocation5 + $0x170] sm:$0xff]  }
  0x5e   :  { %1022 = vmatpush3.bf16.msra.mxu1 %v1136_v19  ;;  %1001 = vmatprep.subr.bf16.mxu0 %v1137_v20  ;;  %v1178_v63 = vld [vmem:[#allocation5 + $0x1f0] sm:$0xff]   ;;  %v1181_v2 = vld [vmem:[#allocation5 + $0x178] sm:$0xff]   ;;  %v1189_v12 = vld [vmem:[#allocation8] sm:$0xff]  }
  0x5f   :  { %1023 = vmatprep.subr.bf16.mxu1 %v1138_v21  ;;  %v1179_v0 = vld [vmem:[#allocation5 + $0x130] sm:$0xff]   ;;  %v1182_v3 = vld [vmem:[#allocation5 + $0x1f8] sm:$0xff]   ;;  %v910_v19 = vld [vmem:[#allocation7] ss:$0 sm:$0xff] }
  0x60   :  { %v1180_v1 = vld [vmem:[#allocation5 + $0x1b0] sm:$0xff]   ;;  %v1183_v4 = vld [vmem:[#allocation5 + $0x138] sm:$0xff]  }
  0x61   :  { %1002 = vmatpush3.bf16.msra.mxu0 %v1139_v22  ;;  %v1184_v5 = vld [vmem:[#allocation5 + $0x1b8] sm:$0xff]   ;;  %v72_v6 = vld [vmem:[#allocation2 + $0x10] sm:$0xff] }
  0x62   :  { %1024 = vmatpush3.bf16.msra.mxu1 %v1140_v23  ;;  %1003 = vmatprep.subr.bf16.mxu0 %v1141_v24  ;;  %v915_v7 = vcombine.low %v72_v6, %v72_v6  ;;  %v916_v8 = vcombine.high %v72_v6, %v72_v6  ;;  %v73_v9 = vld [vmem:[#allocation2 + $0x18] sm:$0xff]  ;;  %v1190_v14 = vld [vmem:[#allocation8 + $0x8] sm:$0xff]  }
  0x63   :  { %1025 = vmatprep.subr.bf16.mxu1 %v1142_v25  ;;  %v917_v10 = vcombine.low %v73_v9, %v73_v9  ;;  %v918_v11 = vcombine.high %v73_v9, %v73_v9  ;;  %v1191_v15 = vld [vmem:[#allocation8 + $0x10] sm:$0xff]   ;;  %v1192_v16 = vld [vmem:[#allocation8 + $0x18] sm:$0xff]  }
  0x65   :  { %1004 = vmatpush3.bf16.msra.mxu0 %v1143_v26 }
  0x66   :  { %1026 = vmatpush3.bf16.msra.mxu1 %v1144_v27  ;;  %1005 = vmatprep.subr.bf16.mxu0 %v1145_v28 }
  0x67   :  { %1027 = vmatprep.subr.bf16.mxu1 %v1146_v29 }
  0x69   :  { %1006 = vmatpush3.bf16.msra.mxu0 %v1147_v30 }
  0x6a   :  { %1028 = vmatpush3.bf16.msra.mxu1 %v1148_v31  ;;  %1035 = vmatprep.subr.bf16.mxu0 %v1153_v38 }
  0x6b   :  { %1057 = vmatprep.subr.bf16.mxu1 %v1154_v39 }
  0x6c   :  { %654 = vmatmul.mubr.bf16.vlgmr.msra.gmra.mrb[0].mxu0 %v911_v34 }
  0x6d   :  { %694 = vmatmul.mubr.bf16.vlgmr.msra.gmra.mrb[0].mxu1 %v913_v36  ;;  %1036 = vmatpush3.bf16.msra.mxu0 %v1155_v40 }
  0x6e   :  { %1058 = vmatpush3.bf16.msra.mxu1 %v1156_v41  ;;  %1037 = vmatprep.subr.bf16.mxu0 %v1157_v42 }
  0x6f   :  { %1059 = vmatprep.subr.bf16.mxu1 %v1158_v43  ;;  %733 = vmatprep.mubr.bf16.mxu0 %v916_v8  ;;  %v1193_v43 = vld [vmem:[#allocation8 + $0x20] sm:$0xff]  }
  0x70   :  { %773 = vmatprep.mubr.bf16.mxu1 %v918_v11 }
  0x71   :  { %1038 = vmatpush3.bf16.msra.mxu0 %v1159_v44  ;;  %v1194_v44 = vld [vmem:[#allocation8 + $0x28] sm:$0xff]  }
  0x72   :  { %1060 = vmatpush3.bf16.msra.mxu1 %v1160_v45  ;;  %1039 = vmatprep.subr.bf16.mxu0 %v1161_v46  ;;  %v1195_v45 = vld [vmem:[#allocation8 + $0x30] sm:$0xff]   ;;  %v1196_v46 = vld [vmem:[#allocation8 + $0x38] sm:$0xff]  }
  0x73   :  { %1061 = vmatprep.subr.bf16.mxu1 %v1162_v47 }
  0x75   :  { %1040 = vmatpush3.bf16.msra.mxu0 %v1163_v48 }
  0x76   :  { %1062 = vmatpush3.bf16.msra.mxu1 %v1164_v49  ;;  %1041 = vmatprep.subr.bf16.mxu0 %v1165_v50 }
  0x77   :  { %1063 = vmatprep.subr.bf16.mxu1 %v1166_v51 }
  0x79   :  { %1042 = vmatpush3.bf16.msra.mxu0 %v1167_v52 }
  0x7a   :  { %1064 = vmatpush3.bf16.msra.mxu1 %v1168_v53  ;;  %1043 = vmatprep.subr.bf16.mxu0 %v1169_v54 }
  0x7b   :  { %1065 = vmatprep.subr.bf16.mxu1 %v1170_v55 }
  0x7d   :  { %1044 = vmatpush3.bf16.msra.mxu0 %v1171_v56 }
  0x7e   :  { %1066 = vmatpush3.bf16.msra.mxu1 %v1172_v57  ;;  %1045 = vmatprep.subr.bf16.mxu0 %v1173_v58 }
  0x7f   :  { %1067 = vmatprep.subr.bf16.mxu1 %v1174_v59 }
  0x81   :  { %1046 = vmatpush3.bf16.msra.mxu0 %v1175_v60 }
  0x82   :  { %1068 = vmatpush3.bf16.msra.mxu1 %v1176_v61  ;;  %1047 = vmatprep.subr.bf16.mxu0 %v1177_v62 }
  0x83   :  { %1069 = vmatprep.subr.bf16.mxu1 %v1178_v63 }
  0x85   :  { %1048 = vmatpush3.bf16.msra.mxu0 %v1179_v0 }
  0x86   :  { %1070 = vmatpush3.bf16.msra.mxu1 %v1180_v1  ;;  %1049 = vmatprep.subr.bf16.mxu0 %v1181_v2 }
  0x87   :  { %1071 = vmatprep.subr.bf16.mxu1 %v1182_v3 }
  0x89   :  { %1050 = vmatpush3.bf16.msra.mxu0 %v1183_v4 }
  0x8a   :  { %1072 = vmatpush3.bf16.msra.mxu1 %v1184_v5  ;;  %1088 = vmatprep.subr.bf16.mxu0 %v1323_v13 }
  0x8c   :  { %734 = vmatmul.mubr.bf16.vlgmr.msra.gmra.mrb[4].mxu0 %v915_v7 }
  0x8d   :  { %774 = vmatmul.mubr.bf16.vlgmr.msra.gmra.mrb[4].mxu1 %v917_v10  ;;  %1089 = vmatpush3.bf16.msra.mxu0 %v1189_v12 }
  0x8e   :  { %1090 = vmatprep.subr.bf16.mxu0 %v1323_v13  ;;  %1104 = vmatprep.mubr.msk.bf16.mxu0 %vm1324_vm0, %v1323_v13 }
  0x91   :  { %1091 = vmatpush3.bf16.msra.mxu0 %v1190_v14 }
  0x92   :  { %1092 = vmatprep.subr.bf16.mxu0 %v1323_v13 }
  0x95   :  { %1093 = vmatpush3.bf16.msra.mxu0 %v1191_v15 }
  0x96   :  { %1094 = vmatprep.subr.bf16.mxu0 %v1323_v13 }
  0x99   :  { %1095 = vmatpush3.bf16.msra.mxu0 %v1192_v16 }
  0x9a   :  { %1096 = vmatprep.subr.bf16.mxu0 %v1323_v13 }
  0x9d   :  { %1097 = vmatpush3.bf16.msra.mxu0 %v1193_v43 }
  0x9e   :  { %1098 = vmatprep.subr.bf16.mxu0 %v1323_v13 }
  0xa1   :  { %1099 = vmatpush3.bf16.msra.mxu0 %v1194_v44 }
  0xa2   :  { %1100 = vmatprep.subr.bf16.mxu0 %v1323_v13 }
  0xa5   :  { %1101 = vmatpush3.bf16.msra.mxu0 %v1195_v45 }
  0xa6   :  { %1102 = vmatprep.subr.bf16.mxu0 %v1323_v13 }
  0xa9   :  { %1103 = vmatpush3.bf16.msra.mxu0 %v1196_v46 }
 0x13f   :  { %v1007_v17 = vpop.f32.mrb[0].mxu0 }
 0x140   :  { %v1029_v18 = vpop.f32.mrb[0].mxu1  ;;  %v1008_v20 = vpop.f32.mrb[1].mxu0 }
 0x141   :  { %v1030_v21 = vpop.f32.mrb[1].mxu1  ;;  %v1009_v22 = vadd.f32 %v1008_v20, %v1007_v17  ;;  %v1010_v24 = vpop.f32.mrb[2].mxu0 }
 0x142   :  { %v1031_v23 = vadd.f32 %v1030_v21, %v1029_v18  ;;  %v1032_v25 = vpop.f32.mrb[2].mxu1  ;;  %v1011_v26 = vpop.f32.mrb[3].mxu0 }
 0x143   :  { %v1033_v27 = vpop.f32.mrb[3].mxu1  ;;  %v656_v28 = vadd.f32 %v1009_v22, %v910_v19 }
 0x145   :  { %v696_v29 = vadd.f32 %v1031_v23, %v656_v28 }
 0x15f   :  { %v1051_v30 = vpop.f32.mrb[4].mxu0 }
 0x160   :  { %v1073_v31 = vpop.f32.mrb[4].mxu1  ;;  %v1052_v32 = vpop.f32.mrb[5].mxu0 }
 0x161   :  { %v1074_v33 = vpop.f32.mrb[5].mxu1  ;;  %v1053_v34 = vadd.f32 %v1052_v32, %v1051_v30  ;;  %v1054_v36 = vpop.f32.mrb[6].mxu0 }
 0x162   :  { %v1075_v35 = vadd.f32 %v1074_v33, %v1073_v31  ;;  %v1076_v37 = vpop.f32.mrb[6].mxu1  ;;  %v1055_v38 = vpop.f32.mrb[7].mxu0 }
 0x163   :  { %v1077_v39 = vpop.f32.mrb[7].mxu1  ;;  %v736_v40 = vadd.f32 %v1053_v34, %v696_v29 }
 0x165   :  { %v776_v41 = vadd.f32 %v1075_v35, %v736_v40 }
 0x167   :  { %v781_v42 = vmul.f32 %v776_v41, %v776_v41 }
 0x169   :  { %782 = vadd.xlane.f32.xlu0 %v781_v42 }
 0x1f6   :  { %v783_v47 = vpop.xlane.xlu0 %782 }
 0x1f7   :  { %v784_v48 = vadd.f32 1e-12, %v783_v47 }
 0x1f9   :  { %1197 = vrsqrt.f32 %v784_v48 }
 0x203   :  { %v1198_v49 = vpop.eup %1197 }
 0x204   :  { %v786_v50 = vmul.f32 %v1198_v49, %v776_v41 }
 0x206   :  { %v787_v51 = vpack.c.bf16 %v786_v50, %v786_v50 }
 0x208   :  { %1105 = vmatmul.mubr.bf16.vlgmr.msra.gmra.mrb[8].mxu0 %v787_v51 }
 0x2db   :  { %v886_v52 = vpop.f32.mrb[8].mxu0 }
 0x2dc   :  { %892 = vst [vmem:[#allocation10] sm:$0xff] %v886_v52  ;;  %v1106_v53 = vpop.f32.mrb[9].mxu0 }
 0x2dd   :  { %v889_v54 = vpop.f32.mrb[10].mxu0 }
 0x2de   :  { %1298 = shalt.err (!%p1295_p8)
}
 0x2df   :  { %s1299_s14 = scalar_lea.hbm %s1421_s4, 128 }
 0x2e0   :  { %p1300_p9 = scmp.ne.s32.totalorder %s1421_s4, %s1299_s14  ;;  %p1303_p10 = scmp.lt.u32.totalorder %s1299_s14, %s1421_s4 }
 0x2e2   :  { %p1305_p11 = pnand %p1303_p10, %p1300_p9 }
 0x2e4   :  { %1308 = shalt.err (!%p1305_p11)
}
 0x2e5   :  { %902 = dma.vmem_to_hbm [thread:$0]  %s900_s25, 128, %s1421_s4, [#allocation4]   ;;  %v1107_v55 = vpop.f32.mrb[11].mxu0 }
 0x2e6   :  { %1315 = dma.done.wait [#allocation4], 128  }
 0x2e7   :  { %1316 = vsyncadd [#allocation4], 4294967168 }
 0x2e8   :  { %906 = vsyncpa [#allocation3], 1 }
 0x2e9   :  { %907 = vsyncpa [#allocation6], 1 }
 0x2ea   :  { %908 = vsyncpa [#allocation9], 1 }
 0x2eb   :  { %909 = vsyncpa [#allocation4], 1 }

</bundles_post_ra>
